<compile_context>
chip_gen: v5e
topology: v5e:2x2
jax: 0.10.0
libtpu: 0.0.40
codegen_flags: <defaults>
</compile_context>

<pallas_src>
import numpy as np
import jax
import jax.numpy as jnp
from jax.experimental import pallas as pl
from jax.experimental.pallas import tpu as pltpu

# -----------------------------------------------------------------------------
# Problem sizes (small, consistent with the module's forward signature)
# -----------------------------------------------------------------------------
B = 2      # batch
L = 8      # num_steps
S = 4      # num_series
P = 4      # num_pred_steps
D = 16     # time_embed_dim
K = 3      # features in other_vars consumed by the Strategy head
MA_K = 3   # moving-average kernel used by DLinear's series decomposition

BS = B * S                      # 8   (batch x series on lanes)
BSD = B * S * D                 # 128 (batch x series x embed on lanes = 1 lane row)
EXTRA_W = B * (1 + K)           # 8   packed [T_next | other_vars] lane width
NFEAT = P * BS + BS + EXTRA_W   # 48  strategy-head features
assert EXTRA_W <= BS            # extras row rides in the (L+1, BS) data slab


# -----------------------------------------------------------------------------
# Fused kernel: Normalizer -> Time2Vec -> proj1 -> [proj2 | DLinear] -> denorm
#               -> Strategy.  Single invocation, batch folded onto lanes.
# -----------------------------------------------------------------------------
def _fused_kernel(xt_ext_ref, ticks_ref,
                  t2v_ref, w1bd_ref, wstage2_ref, wstrat_ref,
                  out_ref):
    xt = xt_ext_ref[:L, :]                                 # (L, BS) time series
    extras = xt_ext_ref[L:L + 1, :EXTRA_W]                 # (1, EXTRA_W) [T_next|other]
    x_last = xt_ext_ref[L - 1:L, :]                        # (1, BS)  X_t

    # --- Normalizer: per (batch, series) column over time (sublane reduction) ---
    mean = jnp.mean(xt, axis=0, keepdims=True)             # (1, BS)
    var = jnp.sum((xt - mean) ** 2, axis=0, keepdims=True) * (1.0 / (L - 1))
    std = jnp.sqrt(var) + 1e-8
    normed = (xt - mean) / std                             # (L, BS)

    # --- Time2Vec over lanes (b, s, d): channel d==0 linear, d>0 sinusoidal ---
    t2v = t2v_ref[...]                                     # (3, BSD) = [w; b; mask]
    arg = ticks_ref[...] * t2v[0:1, :] + t2v[1:2, :]       # (L, BSD)
    te = jnp.where(t2v[2:3, :] != 0.0, arg, jnp.sin(arg))  # (L, BSD)

    # time_proj1 folded per (batch, series): (L, BSD) @ (BSD, BS) -> (L, BS)
    te_proj = jnp.dot(te, w1bd_ref[...], preferred_element_type=jnp.float32)

    # Fused [time_proj2 | DLinear(seasonal + trend)] in ONE matmul, biases folded in.
    w2 = wstage2_ref[...]                                  # (P, 2L + 1)
    stacked = jnp.concatenate([te_proj, normed], axis=0)   # (2L, BS) sublane stack
    pred = (jnp.dot(w2[:, :2 * L], stacked, preferred_element_type=jnp.float32)
            + w2[:, 2 * L:])                               # (P, BS)
    pred = pred * std + mean                               # denormalize

    # --- Strategy head: ONE matmul over [pred(P*BS), X_t(BS), extras(EXTRA_W)] ---
    feat = jnp.concatenate(
        [pred[pp:pp + 1, :] for pp in range(P)] + [x_last, extras],
        axis=1)                                            # (1, NFEAT)
    acc = (jnp.dot(feat, wstrat_ref[:NFEAT, :], preferred_element_type=jnp.float32)
           + wstrat_ref[NFEAT:, :])                        # (1, BS)  (+ bias row)
    out_ref[...] = jnp.maximum(acc, 0.0)


# -----------------------------------------------------------------------------
# Wrapper: host-side layout plumbing + single pallas_call (whole arrays in VMEM)
# -----------------------------------------------------------------------------
@jax.jit
def strategic_t2v_dlinear(x, ticks, t_next, other_vars, packed):
    # (B, L, S) -> (L, B*S): time on sublanes, batch*series on lanes.
    xt = jnp.transpose(x, (1, 0, 2)).reshape(L, BS)
    # Strategy scalar extras per batch: [T_next, other_vars] -> (1, B*(1+K)) -> pad to BS.
    extras = jnp.concatenate([t_next[:, 0, :], other_vars[:, 0, :]],
                             axis=1).reshape(1, EXTRA_W)
    extras = jnp.pad(extras, ((0, 0), (0, BS - EXTRA_W)))
    xt_ext = jnp.concatenate([xt, extras], axis=0)          # (L+1, BS) one data slab
    # (B, L, 1) -> (L, B) -> broadcast to (L, B*S*D) lane order (b, s, d).
    ticks_bsd = jnp.repeat(jnp.transpose(ticks[:, :, 0]), S * D, axis=1)

    out = pl.pallas_call(
        _fused_kernel,
        out_shape=jax.ShapeDtypeStruct((1, BS), jnp.float32),
        in_specs=[pl.BlockSpec(memory_space=pltpu.MemorySpace.VMEM)] * 6,
        out_specs=pl.BlockSpec(memory_space=pltpu.MemorySpace.VMEM),
    )(xt_ext, ticks_bsd,
      packed["t2v_pack"], packed["w1bd"], packed["wstage2"], packed["wstrat"])
    return out.reshape(B, S)


# -----------------------------------------------------------------------------
# Raw (module-shaped) parameters and one-time host-side weight packing
# -----------------------------------------------------------------------------
def init_params(key):
    ks = jax.random.split(key, 15)

    def nrm(k, shape, scale=0.1):
        return (scale * jax.random.normal(k, shape)).astype(jnp.float32)

    return dict(
        t2v_w=nrm(ks[0], (S, D)), t2v_b=nrm(ks[1], (S, D)),
        proj1_w=nrm(ks[2], (D,)), proj1_b=nrm(ks[3], ()),
        proj2_w=nrm(ks[4], (P, L)), proj2_b=nrm(ks[5], (P,)),
        dlin_sw=nrm(ks[6], (P, L)), dlin_sb=nrm(ks[7], (P,)),
        dlin_tw=nrm(ks[8], (P, L)), dlin_tb=nrm(ks[9], (P,)),
        strat_wp=nrm(ks[10], (P, S, S)), strat_wxt=nrm(ks[11], (S, S)),
        strat_wtn=nrm(ks[12], (S,)), strat_wov=nrm(ks[13], (K, S)),
        strat_b=nrm(ks[14], (S,)),
    )


def moving_avg_matrix():
    # kernel MA_K, stride 1, replicate padding (DLinear series_decomp) as an (L, L) matrix.
    A = np.zeros((L, L), np.float64)
    half = (MA_K - 1) // 2
    for i in range(L):
        for dk in range(-half, half + 1):
            j = min(max(i + dk, 0), L - 1)
            A[i, j] += 1.0 / MA_K
    return A


def pack_params(p):
    f = lambda a: np.asarray(a, np.float64)
    SD = S * D

    # --- Time2Vec slab (3, B*S*D): rows = [w, b, linear-channel mask], tiled over batch ---
    w_flat = f(p["t2v_w"]).reshape(1, SD)
    b_flat = f(p["t2v_b"]).reshape(1, SD)
    mask = np.zeros((1, SD)); mask[0, ::D] = 1.0
    t2v_pack = np.concatenate([np.tile(w_flat, (1, B)),
                               np.tile(b_flat, (1, B)),
                               np.tile(mask, (1, B))], axis=0)           # (3, BSD)

    # --- time_proj1 block-diagonal over (batch, series): (B*S*D, B*S) ---
    w1 = f(p["proj1_w"])
    w1bd = np.zeros((BSD, BS))
    for b in range(B):
        for s in range(S):
            col = b * S + s
            w1bd[col * D:(col + 1) * D, col] = w1

    # --- Fused [time_proj2 | DLinear] weight (P, 2L+1), last column = folded bias ---
    A = moving_avg_matrix()
    I = np.eye(L)
    W_eff = f(p["dlin_sw"]) @ (I - A) + f(p["dlin_tw"]) @ A              # (P, L)
    b_total = (f(p["proj2_b"]) + float(p["proj1_b"]) * f(p["proj2_w"]).sum(axis=1)
               + f(p["dlin_sb"]) + f(p["dlin_tb"]))                      # (P,)
    wstage2 = np.concatenate([f(p["proj2_w"]), W_eff, b_total[:, None]], axis=1)

    # --- Strategy slab (NFEAT + 1, B*S); block-diagonal over batch, last row = bias ---
    wp, wxt = f(p["strat_wp"]), f(p["strat_wxt"])
    wtn, wov, sb = f(p["strat_wtn"]), f(p["strat_wov"]), f(p["strat_b"])
    wstrat = np.zeros((NFEAT + 1, BS))
    for b in range(B):
        for t in range(S):
            o = b * S + t
            for pp in range(P):
                for s in range(S):
                    wstrat[pp * BS + b * S + s, o] = wp[pp, s, t]        # pred_demand
            for s in range(S):
                wstrat[P * BS + b * S + s, o] = wxt[s, t]                # X_t
            base = P * BS + BS + b * (1 + K)
            wstrat[base + 0, o] = wtn[t]                                 # T_next
            for k in range(K):
                wstrat[base + 1 + k, o] = wov[k, t]                      # other_vars
            wstrat[NFEAT, o] = sb[t]                                     # bias
    cvt = lambda a: jnp.asarray(a, jnp.float32)
    return dict(t2v_pack=cvt(t2v_pack), w1bd=cvt(w1bd),
                wstage2=cvt(wstage2), wstrat=cvt(wstrat))


# -----------------------------------------------------------------------------
# Pure-JAX reference (unfused math, raw module-shaped params) for correctness
# -----------------------------------------------------------------------------
def reference(x, ticks, t_next, other_vars, p):
    with jax.default_matmul_precision("highest"):
        mean = jnp.mean(x, axis=1, keepdims=True)
        var = jnp.sum((x - mean) ** 2, axis=1, keepdims=True) / (L - 1)
        std = jnp.sqrt(var) + 1e-8
        normed = (x - mean) / std

        arg = ticks[..., None] * p["t2v_w"][None, None] + p["t2v_b"][None, None]
        mask = (jnp.arange(D) == 0).astype(jnp.float32)
        te = mask * arg + (1.0 - mask) * jnp.sin(arg)                     # (B,L,S,D)
        te_proj = jnp.einsum("blsd,d->bls", te, p["proj1_w"]) + p["proj1_b"]
        time_emb = (jnp.einsum("pl,bls->bps", p["proj2_w"], te_proj)
                    + p["proj2_b"][None, :, None])

        A = jnp.asarray(moving_avg_matrix(), jnp.float32)
        trend = jnp.einsum("ij,bjs->bis", A, normed)
        seasonal = normed - trend
        pred = (jnp.einsum("pl,bls->bps", p["dlin_sw"], seasonal) + p["dlin_sb"][None, :, None]
                + jnp.einsum("pl,bls->bps", p["dlin_tw"], trend) + p["dlin_tb"][None, :, None])
        pred = pred + time_emb
        pred = pred * std + mean

        x_t = x[:, -1, :]
        acc = (jnp.einsum("bps,pst->bt", pred, p["strat_wp"])
               + x_t @ p["strat_wxt"]
               + t_next[:, 0, :] * p["strat_wtn"][None, :]
               + other_vars[:, 0, :] @ p["strat_wov"]
               + p["strat_b"][None, :])
        return jnp.maximum(acc, 0.0)


if __name__ == "__main__":
    key = jax.random.PRNGKey(0)
    kx, kt, kn, ko, kp = jax.random.split(key, 5)

    x = jax.random.normal(kx, (B, L, S), jnp.float32)                      # time_series
    base_ticks = 0.25 * jnp.arange(L, dtype=jnp.float32).reshape(1, L, 1)
    ticks = jnp.tile(base_ticks, (B, 1, 1)) + 0.1 * jax.random.normal(kt, (B, 1, 1))
    t_next = jnp.full((B, 1, 1), 0.25 * L, jnp.float32) \
             + 0.05 * jax.random.normal(kn, (B, 1, 1))                     # T_next
    other_vars = jax.random.normal(ko, (B, 1, K), jnp.float32)             # other_vars

    raw = init_params(kp)
    packed = pack_params(raw)

    out = strategic_t2v_dlinear(x, ticks, t_next, other_vars, packed)
    out = jax.block_until_ready(out)

    ref = reference(x, ticks, t_next, other_vars, raw)
    assert out.shape == (B, S), out.shape
    err = float(np.max(np.abs(np.asarray(out) - np.asarray(ref))))
    assert np.allclose(np.asarray(out), np.asarray(ref), rtol=1e-3, atol=1e-3), \
        f"max abs diff {err}"

    print("KERNEL_OK")
</pallas_src>

<mosaic_0001>
module attributes {stable_mosaic.version = 11 : i64} {
  func.func @_fused_kernel(%arg0: memref<9x8xf32, #tpu.memory_space<vmem>>, %arg1: memref<8x128xf32, #tpu.memory_space<vmem>>, %arg2: memref<3x128xf32, #tpu.memory_space<vmem>>, %arg3: memref<128x8xf32, #tpu.memory_space<vmem>>, %arg4: memref<4x17xf32, #tpu.memory_space<vmem>>, %arg5: memref<49x8xf32, #tpu.memory_space<vmem>>, %arg6: memref<1x8xf32, #tpu.memory_space<vmem>>) attributes {dimension_semantics = [], scalar_prefetch = 0 : i64, scratch_operands = 0 : i64, tpu.core_type = #tpu.core_type<tc>} {
    %c0 = arith.constant 0 : index
    %c0_0 = arith.constant 0 : index
    %0 = vector.load %arg0[%c0, %c0_0] : memref<9x8xf32, #tpu.memory_space<vmem>>, vector<8x8xf32>
    %c8 = arith.constant 8 : index
    %c0_1 = arith.constant 0 : index
    %1 = vector.load %arg0[%c8, %c0_1] : memref<9x8xf32, #tpu.memory_space<vmem>>, vector<1x8xf32>
    %c7 = arith.constant 7 : index
    %c0_2 = arith.constant 0 : index
    %2 = vector.load %arg0[%c7, %c0_2] : memref<9x8xf32, #tpu.memory_space<vmem>>, vector<1x8xf32>
    %cst = arith.constant dense<0.000000e+00> : vector<8xf32>
    %3 = vector.multi_reduction <add>, %0, %cst [0] : vector<8x8xf32> to vector<8xf32>
    %4 = vector.shape_cast %3 : vector<8xf32> to vector<1x8xf32>
    %cst_3 = arith.constant 8.000000e+00 : f32
    %5 = vector.broadcast %cst_3 : f32 to vector<1x8xf32>
    %6 = arith.divf %4, %5 : vector<1x8xf32>
    %7 = vector.broadcast %6 : vector<1x8xf32> to vector<8x8xf32>
    %8 = arith.subf %0, %7 : vector<8x8xf32>
    %9 = arith.mulf %8, %8 : vector<8x8xf32>
    %cst_4 = arith.constant dense<0.000000e+00> : vector<8xf32>
    %10 = vector.multi_reduction <add>, %9, %cst_4 [0] : vector<8x8xf32> to vector<8xf32>
    %11 = vector.shape_cast %10 : vector<8xf32> to vector<1x8xf32>
    %cst_5 = arith.constant 0.142857149 : f32
    %12 = vector.broadcast %cst_5 : f32 to vector<1x8xf32>
    %13 = arith.mulf %11, %12 : vector<1x8xf32>
    %14 = math.sqrt %13 : vector<1x8xf32>
    %cst_6 = arith.constant 9.99999993E-9 : f32
    %15 = vector.broadcast %cst_6 : f32 to vector<1x8xf32>
    %16 = arith.addf %14, %15 : vector<1x8xf32>
    %17 = vector.broadcast %6 : vector<1x8xf32> to vector<8x8xf32>
    %18 = arith.subf %0, %17 : vector<8x8xf32>
    %19 = vector.broadcast %16 : vector<1x8xf32> to vector<8x8xf32>
    %20 = arith.divf %18, %19 : vector<8x8xf32>
    %c0_7 = arith.constant 0 : index
    %c0_8 = arith.constant 0 : index
    %21 = vector.load %arg2[%c0_7, %c0_8] : memref<3x128xf32, #tpu.memory_space<vmem>>, vector<3x128xf32>
    %c0_9 = arith.constant 0 : index
    %c0_10 = arith.constant 0 : index
    %22 = vector.load %arg1[%c0_9, %c0_10] : memref<8x128xf32, #tpu.memory_space<vmem>>, vector<8x128xf32>
    %23 = vector.extract_strided_slice %21 {offsets = [0, 0], sizes = [1, 128], strides = [1, 1]} : vector<3x128xf32> to vector<1x128xf32>
    %24 = vector.broadcast %23 : vector<1x128xf32> to vector<8x128xf32>
    %25 = arith.mulf %22, %24 : vector<8x128xf32>
    %26 = vector.extract_strided_slice %21 {offsets = [1, 0], sizes = [1, 128], strides = [1, 1]} : vector<3x128xf32> to vector<1x128xf32>
    %27 = vector.broadcast %26 : vector<1x128xf32> to vector<8x128xf32>
    %28 = arith.addf %25, %27 : vector<8x128xf32>
    %29 = vector.extract_strided_slice %21 {offsets = [2, 0], sizes = [1, 128], strides = [1, 1]} : vector<3x128xf32> to vector<1x128xf32>
    %cst_11 = arith.constant 0.000000e+00 : f32
    %30 = vector.broadcast %cst_11 : f32 to vector<1x128xf32>
    %31 = arith.cmpf one, %29, %30 : vector<1x128xf32>
    %32 = math.sin %28 : vector<8x128xf32>
    %33 = vector.shape_cast %31 : vector<1x128xi1> to vector<1x128xi1>
    %34 = vector.broadcast %33 : vector<1x128xi1> to vector<8x128xi1>
    %35 = arith.select %34, %28, %32 : vector<8x128xi1>, vector<8x128xf32>
    %c0_12 = arith.constant 0 : index
    %c0_13 = arith.constant 0 : index
    %36 = vector.load %arg3[%c0_12, %c0_13] : memref<128x8xf32, #tpu.memory_space<vmem>>, vector<128x8xf32>
    %cst_14 = arith.constant dense<0.000000e+00> : vector<8x8xf32>
    %37 = tpu.matmul %35, %36, %cst_14 {dimension_numbers = #tpu.dot_dimension_numbers<[1], [0], [0], [1], [0, 0, 1, 1], [], []>} : vector<8x128xf32>, vector<128x8xf32>, vector<8x8xf32> -> vector<8x8xf32>
    %c0_15 = arith.constant 0 : index
    %c0_16 = arith.constant 0 : index
    %38 = vector.load %arg4[%c0_15, %c0_16] : memref<4x17xf32, #tpu.memory_space<vmem>>, vector<4x17xf32>
    %39 = tpu.concatenate %37, %20 in 0 : vector<8x8xf32>, vector<8x8xf32> -> vector<16x8xf32>
    %40 = vector.extract_strided_slice %38 {offsets = [0, 0], sizes = [4, 16], strides = [1, 1]} : vector<4x17xf32> to vector<4x16xf32>
    %cst_17 = arith.constant dense<0.000000e+00> : vector<4x8xf32>
    %41 = tpu.matmul %40, %39, %cst_17 {dimension_numbers = #tpu.dot_dimension_numbers<[1], [0], [0], [1], [0, 0, 1, 1], [], []>} : vector<4x16xf32>, vector<16x8xf32>, vector<4x8xf32> -> vector<4x8xf32>
    %42 = vector.extract_strided_slice %38 {offsets = [0, 16], sizes = [4, 1], strides = [1, 1]} : vector<4x17xf32> to vector<4x1xf32>
    %43 = vector.broadcast %42 : vector<4x1xf32> to vector<4x8xf32>
    %44 = arith.addf %41, %43 : vector<4x8xf32>
    %45 = vector.broadcast %16 : vector<1x8xf32> to vector<4x8xf32>
    %46 = arith.mulf %44, %45 : vector<4x8xf32>
    %47 = vector.broadcast %6 : vector<1x8xf32> to vector<4x8xf32>
    %48 = arith.addf %46, %47 : vector<4x8xf32>
    %49 = vector.extract_strided_slice %48 {offsets = [0, 0], sizes = [1, 8], strides = [1, 1]} : vector<4x8xf32> to vector<1x8xf32>
    %50 = vector.extract_strided_slice %48 {offsets = [1, 0], sizes = [1, 8], strides = [1, 1]} : vector<4x8xf32> to vector<1x8xf32>
    %51 = vector.extract_strided_slice %48 {offsets = [2, 0], sizes = [1, 8], strides = [1, 1]} : vector<4x8xf32> to vector<1x8xf32>
    %52 = vector.extract_strided_slice %48 {offsets = [3, 0], sizes = [1, 8], strides = [1, 1]} : vector<4x8xf32> to vector<1x8xf32>
    %53 = tpu.concatenate %49, %50, %51, %52, %2, %1 in 1 : vector<1x8xf32>, vector<1x8xf32>, vector<1x8xf32>, vector<1x8xf32>, vector<1x8xf32>, vector<1x8xf32> -> vector<1x48xf32>
    %c0_18 = arith.constant 0 : index
    %c0_19 = arith.constant 0 : index
    %54 = vector.load %arg5[%c0_18, %c0_19] : memref<49x8xf32, #tpu.memory_space<vmem>>, vector<48x8xf32>
    %cst_20 = arith.constant dense<0.000000e+00> : vector<1x8xf32>
    %55 = tpu.matmul %53, %54, %cst_20 {dimension_numbers = #tpu.dot_dimension_numbers<[1], [0], [0], [1], [0, 0, 1, 1], [], []>} : vector<1x48xf32>, vector<48x8xf32>, vector<1x8xf32> -> vector<1x8xf32>
    %c48 = arith.constant 48 : index
    %c0_21 = arith.constant 0 : index
    %56 = vector.load %arg5[%c48, %c0_21] : memref<49x8xf32, #tpu.memory_space<vmem>>, vector<1x8xf32>
    %57 = arith.addf %55, %56 : vector<1x8xf32>
    %cst_22 = arith.constant 0.000000e+00 : f32
    %58 = vector.broadcast %cst_22 : f32 to vector<1x8xf32>
    %59 = arith.maximumf %57, %58 : vector<1x8xf32>
    %c0_23 = arith.constant 0 : index
    %c0_24 = arith.constant 0 : index
    %60 = vector.load %arg6[%c0_23, %c0_24] : memref<1x8xf32, #tpu.memory_space<vmem>>, vector<1x8xf32>
    tpu.vector_store %arg6[%c0_23, %c0_24], %59 {strides = array<i32>} : memref<1x8xf32, #tpu.memory_space<vmem>>, vector<1x8xf32>,
    return
  }
}

</mosaic_0001>

<bundles_post_ra>
// kernel: strategic_t2v_dlinear.1
= control target key start
LH: loop header
LB: loop body
LE: loop exit
PB: predicated region body
PF: predicated region fallthrough
CT: control target
= control target key end

     0   :  { %v406_v31 = vmov 683565275   ;;  %v407_v33 = vmov 2475754826   ;;  %v408_v35 = vmov 2131351028   ;;  %s617_s3 = inlined_call_operand.vmem [shape: f32[128,8], index: 3, kind: input, shape index: {}]   ;;  %s618_s1 = inlined_call_operand.vmem [shape: f32[8,128], index: 1, kind: input, shape index: {}]   ;;  %s619_s2 = inlined_call_operand.vmem [shape: f32[3,128], index: 2, kind: input, shape index: {}]   ;;  %s620_s0 = inlined_call_operand.vmem [shape: f32[9,8], index: 0, kind: input, shape index: {}]   ;;  %s621_s4 = inlined_call_operand.vmem [shape: f32[4,17], index: 4, kind: input, shape index: {}]   ;;  %s622_s5 = inlined_call_operand.vmem [shape: f32[49,8], index: 5, kind: input, shape index: {}]   ;;  %s623_s6 = inlined_call_operand.vmem [shape: f32[1,8], index: 6, kind: output, shape index: {}]  }
   0x1   :  { %v261_v0 = vld [vmem:[%s617_s3 + $0x78] sm:$0xff]  ;;  %v260_v1 = vld [vmem:[%s617_s3 + $0x70] sm:$0xff]  ;;  %v259_v2 = vld [vmem:[%s617_s3 + $0x68] sm:$0xff]  ;;  %v409_v37 = vmov 2102212464   ;;  %vm26_vm13 = vcmask 64512  }
   0x2   :  { %262 = vmatpush.msra.mxu0 %v261_v0  ;;  %v258_v3 = vld [vmem:[%s617_s3 + $0x60] sm:$0xff]  ;;  %v257_v6 = vld [vmem:[%s617_s3 + $0x58] sm:$0xff]  ;;  %v256_v9 = vld [vmem:[%s617_s3 + $0x50] sm:$0xff]  ;;  %v410_v39 = vmov 920167782   ;;  %s415_s12 = smov 32  }
   0x3   :  { %v470_v4 = vld [vmem:[%s619_s2] sm:$0x7]  ;;  %v255_v11 = vld [vmem:[%s617_s3 + $0x48] sm:$0xff]  ;;  %v253_v15 = vld [vmem:[%s617_s3 + $0x38] sm:$0xff]  ;;  %v411_v46 = vmov 1326507024  }
   0x4   :  { %263 = vmatpush.msra.mxu0 %v260_v1  ;;  %v81_v5 = vld [vmem:[%s618_s1] sm:$0xff]  ;;  %v82_v7 = vperm.slane %v470_v4, 0  ;;  %v84_v8 = vperm.slane %v470_v4, 1  ;;  %v252_v18 = vld [vmem:[%s617_s3 + $0x30] sm:$0xff]  ;;  %v251_v20 = vld [vmem:[%s617_s3 + $0x28] sm:$0xff]  ;;  %vm86_vm11 = vcmp.ne.f32.partialorder %v470_v4, 0.0 }
   0x5   :  { %v254_v13 = vld [vmem:[%s617_s3 + $0x40] sm:$0xff]  ;;  %v249_v25 = vld [vmem:[%s617_s3 + $0x18] sm:$0xff]  ;;  %v248_v29 = vld [vmem:[%s617_s3 + $0x10] sm:$0xff]  ;;  %s416_s1 = smov 40   ;;  %s418_s14 = smov 8  }
   0x6   :  { %264 = vmatpush.msra.mxu0 %v259_v2  ;;  %v83_v10 = vmul.f32 %v82_v7, %v81_v5  ;;  %v250_v23 = vld [vmem:[%s617_s3 + $0x20] sm:$0xff]  ;;  %v247_v41 = vld [vmem:[%s617_s3 + $0x8] sm:$0xff]  ;;  %s419_s15 = smov 24  }
   0x7   :  { %v246_v49 = vld [vmem:[%s617_s3] sm:$0xff] }
   0x8   :  { %265 = vmatpush.msra.mxu0 %v258_v3  ;;  %v486_v12 = vadd.f32 %v84_v8, %v83_v10 }
   0xa   :  { %266 = vmatpush.msra.mxu0 %v257_v6  ;;  %v90_v14 = vand.u32 2139095040, %v486_v12  ;;  %v87_v17 = vand.u32 2147483647, %v486_v12  ;;  %vm89_vm14 = vcmp.lt.s32.totalorder %v486_v12, 0 }
   0xc   :  { %267 = vmatpush.msra.mxu0 %v256_v9  ;;  %v91_v16 = vshrl.u32 %v90_v14, 23  ;;  %v94_v22 = vand.u32 8388607, %v87_v17  ;;  %vm564_vm15 = vcmp.le.f32.partialorder %v87_v17, 0.7853982 }
   0xe   :  { %268 = vmatpush.msra.mxu0 %v255_v11  ;;  %v380_v19 = vadd.s32 4294967169, %v91_v16  ;;  %v95_v27 = vor.u32 8388608, %v94_v22 }
  0x10   :  { %269 = vmatpush.msra.mxu0 %v254_v13  ;;  %v97_v21 = vadd.s32 1, %v380_v19  ;;  %v519_v48 = vshll.u32 %v95_v27, 8 }
  0x12   :  { %270 = vmatpush.msra.mxu0 %v253_v15  ;;  %vm98_vm0 = vcmp.gt.s32.totalorder %v97_v21, 0  ;;  %v136_v61 = vand.u32 65535, %v519_v48  ;;  %v137_v62 = vshrl.u32 %v519_v48, 16 }
  0x13   :  { %v99_v24 = vsel %vm98_vm0, %v97_v21, 0 }
  0x14   :  { %271 = vmatpush.msra.mxu0 %v252_v18  ;;  %v101_v26 = vand.u32 31, %v99_v24  ;;  %v510_v28 = vshrl.u32 %v99_v24, 5  ;;  %v412_v24 = vmov 0  }
  0x16   :  { %272 = vmatpush.msra.mxu0 %v251_v20  ;;  %v102_v30 = vsub.s32 32, %v101_v26  ;;  %v104_v32 = vshll.u32 %v406_v31, %v101_v26  ;;  %v107_v34 = vshll.u32 %v407_v33, %v101_v26  ;;  %v110_v36 = vshll.u32 %v408_v35, %v101_v26 }
  0x17   :  { %v113_v38 = vshll.u32 %v409_v37, %v101_v26  ;;  %v116_v40 = vshll.u32 %v410_v39, %v101_v26  ;;  %vm119_vm1 = vcmp.lt.s32.totalorder %v510_v28, 1  ;;  %vm122_vm2 = vcmp.lt.s32.totalorder %v510_v28, 4 }
  0x18   :  { %273 = vmatpush.msra.mxu0 %v250_v23  ;;  %v105_v42 = vshrl.u32 %v407_v33, %v102_v30  ;;  %v108_v43 = vshrl.u32 %v408_v35, %v102_v30  ;;  %v111_v44 = vshrl.u32 %v409_v37, %v102_v30  ;;  %v114_v45 = vshrl.u32 %v410_v39, %v102_v30 }
  0x19   :  { %v117_v47 = vshrl.u32 %v411_v46, %v102_v30  ;;  %vm121_vm3 = vcmp.lt.s32.totalorder %v510_v28, 3  ;;  %vm120_vm4 = vcmp.lt.s32.totalorder %v510_v28, 2  ;;  %v103_v6 = vshrl.u32 %v406_v31, %v102_v30 }
  0x1a   :  { %274 = vmatpush.msra.mxu0 %v249_v25  ;;  %v106_v50 = vor.u32 %v105_v42, %v104_v32  ;;  %v109_v51 = vor.u32 %v108_v43, %v107_v34  ;;  %v112_v52 = vor.u32 %v111_v44, %v110_v36  ;;  %v115_v53 = vor.u32 %v114_v45, %v113_v38 }
  0x1b   :  { %v118_v54 = vor.u32 %v117_v47, %v116_v40 }
  0x1c   :  { %275 = vmatpush.msra.mxu0 %v248_v29  ;;  %v127_v55 = vsel %vm119_vm1, %v106_v50, %v109_v51  ;;  %v131_v56 = vsel %vm119_vm1, %v109_v51, %v112_v52  ;;  %v128_v57 = vsel %vm122_vm2, %v115_v53, 920167782  ;;  %v123_v21 = vsel %vm119_vm1, %v103_v6, %v106_v50  ;;  %v23_v6 = vld [vmem:[%s620_s0] sm:$0xff] }
  0x1d   :  { %v132_v58 = vsel %vm122_vm2, %v118_v54, 1326507024  ;;  %v129_v59 = vsel %vm121_vm3, %v112_v52, %v128_v57  ;;  %v124_v23 = vsel %vm122_vm2, %v112_v52, 2102212464  ;;  %v27_v4 = vsel %vm26_vm13, %v23_v6, 0.0 }
  0x1e   :  { %276 = vmatpush.msra.mxu0 %v247_v41  ;;  %v133_v60 = vsel %vm121_vm3, %v115_v53, %v132_v58  ;;  %v130_v63 = vsel %vm120_vm4, %v127_v55, %v129_v59  ;;  %v125_v34 = vsel %vm121_vm3, %v109_v51, %v124_v23 }
  0x1f   :  { %v134_v0 = vsel %vm120_vm4, %v131_v56, %v133_v60  ;;  %v160_v3 = vand.u32 65535, %v130_v63  ;;  %v161_v5 = vshrl.u32 %v130_v63, 16  ;;  %v126_v42 = vsel %vm120_vm4, %v123_v21, %v125_v34 }
  0x20   :  { %277 = vmatpush.msra.mxu0 %v246_v49  ;;  %v138_v1 = vand.u32 65535, %v134_v0  ;;  %v139_v2 = vshrl.u32 %v134_v0, 16  ;;  %v180_v46 = vmul.u32 %v519_v48, %v126_v42  ;;  %vm230_vm4 = vweird.f32 %v486_v12 }
  0x21   :  { %v162_v10 = vmul.u32 %v160_v3, %v136_v61  ;;  %v163_v11 = vmul.u32 %v161_v5, %v136_v61  ;;  %v164_v13 = vmul.u32 %v160_v3, %v137_v62  ;;  %v165_v18 = vmul.u32 %v161_v5, %v137_v62 }
  0x22   :  { %v140_v7 = vmul.u32 %v138_v1, %v136_v61  ;;  %v141_v8 = vmul.u32 %v139_v2, %v136_v61  ;;  %v142_v9 = vmul.u32 %v138_v1, %v137_v62  ;;  %v143_v14 = vmul.u32 %v139_v2, %v137_v62 }
  0x23   :  { %v166_v19 = vshll.u32 %v163_v11, 16  ;;  %v168_v20 = vshll.u32 %v164_v13, 16  ;;  %v167_v32 = vshrl.u32 %v163_v11, 16  ;;  %v169_v38 = vshrl.u32 %v164_v13, 16 }
  0x24   :  { %v144_v15 = vshll.u32 %v141_v8, 16  ;;  %v146_v16 = vshll.u32 %v142_v9, 16  ;;  %v145_v27 = vshrl.u32 %v141_v8, 16  ;;  %v147_v35 = vshrl.u32 %v142_v9, 16 }
  0x25   :  { %vm170_vm6 = vc.u32 %v162_v10, %v166_v19  ;;  %v172_v26 = vadd.s32 %v166_v19, %v162_v10  ;;  %v555_v62 = vsel %vm86_vm11, 1, %v412_v24  ;;  %v28_v9 = vrot.slane %v27_v4, 4 }
  0x26   :  { %vm148_vm5 = vc.u32 %v140_v7, %v144_v15  ;;  %v150_v22 = vadd.s32 %v144_v15, %v140_v7  ;;  %v171_v30 = vsel %vm170_vm6, 1, %v412_v24  ;;  %v413_v7 = vmov 8.0  }
  0x27   :  { %v149_v25 = vsel %vm148_vm5, 1, %v412_v24  ;;  %v173_v33 = vadd.s32 %v171_v30, %v165_v18  ;;  %vm174_vm8 = vc.u32 %v172_v26, %v168_v20  ;;  %v176_v41 = vadd.s32 %v172_v26, %v168_v20 }
  0x28   :  { %v151_v29 = vadd.s32 %v149_v25, %v143_v14  ;;  %vm152_vm7 = vc.u32 %v150_v22, %v146_v16  ;;  %v175_v37 = vsel %vm174_vm8, 1, %v412_v24  ;;  %400 = vrcp.f32 %v413_v7 }
  0x29   :  { %v153_v31 = vsel %vm152_vm7, 1, %v412_v24  ;;  %v177_v39 = vadd.s32 %v175_v37, %v173_v33  ;;  %v29_v11 = vadd.f32 %v28_v9, %v27_v4 }
  0x2a   :  { %v155_v36 = vadd.s32 %v153_v31, %v151_v29 }
  0x2b   :  { %v178_v43 = vadd.s32 %v177_v39, %v167_v32  ;;  %v30_v16 = vrot.slane %v29_v11, 2 }
  0x2c   :  { %v156_v40 = vadd.s32 %v155_v36, %v145_v27 }
  0x2d   :  { %v179_v45 = vadd.s32 %v178_v43, %v169_v38  ;;  %v31_v20 = vadd.f32 %v30_v16, %v29_v11 }
  0x2e   :  { %v157_v44 = vadd.s32 %v156_v40, %v147_v35  ;;  %v401_v18 = vpop.eup %400 }
  0x2f   :  { %v183_v47 = vadd.s32 1, %v179_v45  ;;  %v35_v21 = vmul.f32 8.0, %v401_v18  ;;  %v32_v25 = vrot.slane %v31_v20, 1  ;;  %vm39_vm0 = vweird.f32 %v401_v18 }
  0x30   :  { %vm182_vm9 = vc.u32 %v157_v44, %v176_v41  ;;  %v181_v28 = vadd.s32 %v176_v41, %v157_v44 }
  0x31   :  { %v184_v49 = vsel %vm182_vm9, %v183_v47, %v179_v45  ;;  %v36_v26 = vsub.f32 1.0, %v35_v21  ;;  %v33_v31 = vadd.f32 %v32_v25, %v31_v20  ;;  %v414_v25 = vmov 16  }
  0x32   :  { %v185_v50 = vadd.s32 %v184_v49, %v180_v46  ;;  %399 = vset.pattern.permute.xlu0 %v414_v25 }
  0x33   :  { %v37_v30 = vmul.f32 %v401_v18, %v36_v26 }
  0x34   :  { %v186_v51 = vadd.s32 536870912, %v185_v50 }
  0x35   :  { %v38_v34 = vadd.f32 %v401_v18, %v37_v30 }
  0x36   :  { %v187_v52 = vshrl.u32 %v186_v51, 30 }
  0x37   :  { %v40_v38 = vsel %vm39_vm0, %v401_v18, %v38_v34  ;;  %vm340_vm0 = vcmask 326656  }
  0x38   :  { %v188_v53 = vshll.u32 %v187_v52, 30  ;;  %v211_v13 = vsub.s32 4, %v187_v52  ;;  %v573_v39 = vmul.f32 %v40_v38, %v33_v31  ;;  %v346_v38 = vld [vmem:[%s622_s5 + $0x20] sm:$0xff] }
  0x3a   :  { %v189_v54 = vsub.s32 %v185_v50, %v188_v53  ;;  %v212_v22 = vsel %vm89_vm14, %v211_v13, %v187_v52  ;;  %v42_v43 = vsub.f32 %v23_v6, %v573_v39  ;;  %v243_v53 = vperm.slane %v555_v62, 2 }
  0x3b   :  { %v214_v17 = vsel %vm564_vm15, 0, %v212_v22 }
  0x3c   :  { %vm190_vm10 = vcmp.lt.s32.totalorder %v189_v54, 0  ;;  %v191_v55 = vsub.s32 0, %v189_v54  ;;  %v231_v35 = vadd.s32 3, %v214_v17  ;;  %v43_v46 = vmul.f32 %v42_v43, %v42_v43  ;;  %v25_v17 = vld [vmem:[%s620_s0 + $0x7] sm:$0x1] }
  0x3d   :  { %vm244_vm5 = vcmp.eq.s32.totalorder %v243_v53, 1  ;;  %327 = vrot.lane.b32.xlu2 %v25_v17, %s415_s12 }
  0x3e   :  { %v192_v56 = vsel %vm190_vm10, %v191_v55, %v189_v54  ;;  %v232_v42 = vand.u32 3, %v231_v35  ;;  %v44_v50 = vsel %vm26_vm13, %v43_v46, 0.0 }
  0x3f   :  { %v193_v57 = vclz %v192_v56 }
  0x40   :  { %vm237_vm1 = vcmp.eq.s32.totalorder %v232_v42, 2  ;;  %vm234_vm2 = vcmp.eq.s32.totalorder %v232_v42, 0  ;;  %vm233_vm3 = vcmp.lt.s32.totalorder %v232_v42, 2  ;;  %v342_v42 = vld [vmem:[%s622_s5] sm:$0xff] }
  0x41   :  { %v381_v58 = vadd.s32 4294967294, %v193_v57 }
  0x43   :  { %vm382_vm12 = vcmp.lt.s32.totalorder %v381_v58, 0 }
  0x44   :  { %v196_v59 = vsel %vm382_vm12, 0, %v381_v58  ;;  %vm288_vm12 = vcmask 130048  }
  0x45   :  { %v197_v60 = vsub.s32 32, %v196_v59  ;;  %v198_v48 = vshll.u32 %v189_v54, %v196_v59  ;;  %v201_v61 = vsub.s32 4294967266, %v196_v59  ;;  %v45_v54 = vrot.slane %v44_v50, 4 }
  0x47   :  { %v199_v63 = vshrl.u32 %v181_v28, %v197_v60  ;;  %v202_v0 = vadd.s32 127, %v201_v61  ;;  %v46_v57 = vadd.f32 %v45_v54, %v44_v50  ;;  %v348_v54 = vld [vmem:[%s622_s5 + $0x30] sm:$0x1] }
  0x49   :  { %v200_v1 = vor.u32 %v199_v63, %v198_v48  ;;  %v203_v2 = vshll.u32 %v202_v0, 23  ;;  %v47_v28 = vrot.slane %v46_v57, 2 }
  0x4b   :  { %v204_v3 = vor.u32 4788187, %v203_v2  ;;  %v207_v5 = vcvt.s32.f32 %v200_v1  ;;  %v48_v48 = vadd.f32 %v47_v28, %v46_v57 }
  0x4d   :  { %v205_v8 = vand.u32 2147483647, %v204_v3  ;;  %v49_v63 = vrot.slane %v48_v48, 1 }
  0x4f   :  { %v208_v10 = vmul.f32 %v207_v5, %v205_v8  ;;  %v50_v0 = vadd.f32 %v49_v63, %v48_v48 }
  0x51   :  { %v209_v15 = vxor.u32 2147483648, %v208_v10  ;;  %v51_v62 = vmul.f32 0.14285715, %v50_v0 }
  0x53   :  { %v210_v19 = vsel %vm89_vm14, %v209_v15, %v208_v10  ;;  %402 = vrsqrt.f32 %v51_v62  ;;  %vm59_vm6 = vcmp.eq.f32.partialorder %v51_v62, inf  ;;  %v62_v7 = vand.u32 2147483648, %v51_v62 }
  0x54   :  { %v213_v23 = vsel %vm564_vm15, %v486_v12, %v210_v19  ;;  %vm61_vm7 = vcmp.eq.f32.partialorder %v51_v62, 0.0  ;;  %vm336_vm14 = vcmask 195584   ;;  %vm338_vm15 = vcmask 261120  }
  0x55   :  { %v215_v24 = vmul.f32 %v213_v23, %v213_v23 }
  0x57   :  { %v216_v27 = vmul.f32 -0.001358992, %v215_v24  ;;  %v223_v29 = vmul.f32 -0.00019511016, %v215_v24 }
  0x59   :  { %v217_v32 = vadd.f32 0.041655596, %v216_v27  ;;  %v224_v33 = vadd.f32 0.008332121, %v223_v29  ;;  %v403_v1 = vpop.eup %402  ;;  %v24_v27 = vld [vmem:[%s620_s0 + $0x8] sm:$0x1] }
  0x5a   :  { %v53_v2 = vmul.f32 %v403_v1, %v51_v62  ;;  %331 = vrot.lane.b32.xlu2 %v24_v27, %s416_s1 }
  0x5b   :  { %v218_v36 = vmul.f32 %v217_v32, %v215_v24  ;;  %v225_v37 = vmul.f32 %v224_v33, %v215_v24 }
  0x5c   :  { %v54_v3 = vmul.f32 %v403_v1, %v53_v2 }
  0x5d   :  { %v219_v40 = vadd.f32 -0.4999988, %v218_v36  ;;  %v226_v41 = vadd.f32 -0.16666654, %v225_v37  ;;  %v347_v37 = vld [vmem:[%s622_s5 + $0x28] sm:$0xff] }
  0x5e   :  { %v55_v5 = vmul.f32 0.5, %v54_v3  ;;  %363 = vmatpush.msra.mxu2 %v347_v37 }
  0x5f   :  { %v220_v44 = vmul.f32 %v219_v40, %v215_v24  ;;  %v227_v45 = vmul.f32 %v226_v41, %v215_v24  ;;  %v282_v24 = vld [vmem:[%s621_s4] sm:$0xf]  ;;  %s417_s4 = smov 16   ;;  %v344_v40 = vld [vmem:[%s622_s5 + $0x10] sm:$0xff]  ;;  %v343_v41 = vld [vmem:[%s622_s5 + $0x8] sm:$0xff] }
  0x60   :  { %v56_v6 = vsub.f32 1.5, %v55_v5  ;;  %285 = vperm.xlu0 %399, %v282_v24   ;;  %364 = vmatpush.msra.mxu2 %v346_v38 }
  0x61   :  { %v221_v47 = vadd.f32 1.0, %v220_v44  ;;  %v228_v49 = vadd.f32 1.0, %v227_v45 }
  0x62   :  { %v57_v4 = vmul.f32 %v403_v1, %v56_v6 }
  0x63   :  { %v229_v51 = vmul.f32 %v228_v49, %v213_v23  ;;  %v238_v52 = vxor.u32 2147483648, %v221_v47 }
  0x64   :  { %v58_v8 = vmul.f32 %v57_v4, %v51_v62 }
  0x65   :  { %v235_v55 = vxor.u32 2147483648, %v229_v51  ;;  %v239_v56 = vsel %vm237_vm1, %v238_v52, %v229_v51  ;;  %vm349_vm1 = vcmask 392192  }
  0x66   :  { %v60_v9 = vsel %vm59_vm6, %v51_v62, %v58_v8 }
  0x67   :  { %v236_v58 = vsel %vm234_vm2, %v221_v47, %v235_v55  ;;  %v63_v10 = vsel %vm61_vm7, %v62_v7, %v60_v9  ;;  %vm374_vm2 = vcmask 57344  }
  0x68   :  { %v240_v59 = vsel %vm233_vm3, %v236_v58, %v239_v56  ;;  %v64_v11 = vadd.f32 1e-08, %v63_v10 }
  0x69   :  { %v241_v60 = vsel %vm230_vm4, nan, %v240_v59 }
  0x6a   :  { %v245_v61 = vsel %vm244_vm5, %v486_v12, %v241_v60  ;;  %404 = vrcp.f32 %v64_v11  ;;  %v76_v14 = vand.u32 2147483648, %v64_v11  ;;  %vm70_vm8 = vweird.f32 %v64_v11 }
  0x6b   :  { %278 = vmatmul.f32.vlgmr.msra.gmra.mxu0 %v245_v61  ;;  %v74_v16 = vand.u32 2147483647, %v64_v11 }
  0x6c   :  { %v77_v19 = vor.u32 1.1754944e-38, %v76_v14 }
  0x6d   :  { %vm75_vm11 = vcmp.eq.f32.partialorder %v74_v16, 8.507059e+37 }
  0x70   :  { %v405_v12 = vpop.eup %404 }
  0x71   :  { %v66_v13 = vmul.f32 %v405_v12, %v64_v11  ;;  %vm71_vm9 = vweird.f32 %v405_v12 }
  0x72   :  { %vm72_vm10 = vmor %vm70_vm8, %vm71_vm9 }
  0x73   :  { %v67_v15 = vsub.f32 1.0, %v66_v13 }
  0x75   :  { %v68_v18 = vmul.f32 %v405_v12, %v67_v15 }
  0x77   :  { %v69_v20 = vadd.f32 %v405_v12, %v68_v18 }
  0x79   :  { %v73_v21 = vsel %vm72_vm10, %v405_v12, %v69_v20 }
  0x7a   :  { %v78_v22 = vsel %vm75_vm11, %v77_v19, %v73_v21 }
  0x7b   :  { %v79_v23 = vmul.f32 %v78_v22, %v42_v43 }
  0x7d   :  { %305 = vmatpush.msra.mxu1 %v79_v23 }
  0x97   :  { %v328_v43 = vpop.permute.xlu2 %327 }
  0xb4   :  { %v332_v50 = vpop.permute.xlu2 %331 }
  0xd2   :  { %v286_v29 = vpop.permute.xlu0 %285 }
  0xe8   :  { %v279_v26 = vpop.f32.mrf.mxu0 }
  0xe9   :  { %306 = vmatpush.msra.mxu1 %v279_v26 }
  0xea   :  { %383 = vmatmul.msk.f32.vlgmr.msra.gmra.mxu1 %vm288_vm12, %v282_v24 }
 0x167   :  { %v308_v30 = vpop.f32.mrf.mxu1 }
 0x168   :  { %v309_v31 = vadd.f32 %v308_v30, %v286_v29 }
 0x16a   :  { %v311_v32 = vmul.f32 %v309_v31, %v64_v11 }
 0x16c   :  { %v312_v33 = vadd.f32 %v311_v32, %v573_v39  ;;  %v345_v39 = vld [vmem:[%s622_s5 + $0x18] sm:$0xff] }
 0x16d   :  { %365 = vmatpush.msra.mxu2 %v345_v39 }
 0x16e   :  { %v318_v34 = vrot.slane %v312_v33, 2  ;;  %v314_v35 = vrot.slane %v312_v33, 1  ;;  %v322_v36 = vrot.slane %v312_v33, 3 }
 0x16f   :  { %366 = vmatpush.msra.mxu2 %v344_v40 }
 0x170   :  { %319 = vrot.lane.b32.xlu1 %v318_v34, %s417_s4  ;;  %315 = vrot.lane.b32.xlu0 %v314_v35, %s418_s14 }
 0x171   :  { %367 = vmatpush.msra.mxu2 %v343_v41 }
 0x173   :  { %368 = vmatpush.msra.mxu2 %v342_v42 }
 0x178   :  { %323 = vrot.lane.b32.xlu1 %v322_v36, %s419_s15 }
 0x1e2   :  { %v320_v44 = vpop.permute.xlu1 %319  ;;  %v316_v45 = vpop.permute.xlu0 %315 }
 0x1e3   :  { %v334_v46 = vsel %vm26_vm13, %v312_v33, %v316_v45 }
 0x1e4   :  { %v335_v49 = vsel %vm288_vm12, %v334_v46, %v320_v44 }
 0x1ea   :  { %v324_v47 = vpop.permute.xlu1 %323 }
 0x1eb   :  { %v337_v51 = vsel %vm336_vm14, %v335_v49, %v324_v47 }
 0x1ec   :  { %v339_v52 = vsel %vm338_vm15, %v337_v51, %v328_v43 }
 0x1ed   :  { %v341_v53 = vsel %vm340_vm0, %v339_v52, %v332_v50 }
 0x1ee   :  { %384 = vmatmul.msk.f32.vlgmr.msra.gmra.mxu2 %vm349_vm1, %v341_v53 }
 0x271   :  { %v370_v55 = vpop.f32.mrf.mxu2 }
 0x272   :  { %v371_v56 = vadd.f32 %v370_v55, %v348_v54 }
 0x274   :  { %v373_v57 = vmax.f32 %v371_v56, 0.0 }
 0x276   :  { %375 = vst.msk [vmem:[%s623_s6] sm:$0x1] %vm374_vm2, %v373_v57 }

</bundles_post_ra>
